<compile_context>
chip_gen: v5e
topology: v5e:2x2
jax: 0.10.0
libtpu: 0.0.40
codegen_flags: <defaults>
</compile_context>

<pallas_src>
import jax
import jax.numpy as jnp
from jax.experimental import pallas as pl
from jax.experimental.pallas import tpu as pltpu


LANE = 128
SUBLANE = 8


def _round_up(n, m):
    return ((n + m - 1) // m) * m


# --------------------------------------------------------------------------
# Kernel
# --------------------------------------------------------------------------
def mlp_policy_kernel(x_ref, w1_ref, b1_ref, w2_ref, b2_ref, w3_ref, b3_ref,
                      out_ref):
    # x block: (bm, in_dim) in its original dtype -> bf16 for the MXU inputs.
    xb = x_ref[...].astype(jnp.bfloat16)

    # backbone: Linear -> ReLU -> Linear -> ReLU
    # (bf16 MXU inputs, f32 accumulation, f32 elementwise)
    h1 = jnp.dot(xb, w1_ref[...], preferred_element_type=jnp.float32)
    h1 = jnp.maximum(h1 + b1_ref[...], 0.0)

    h2 = jnp.dot(h1.astype(jnp.bfloat16), w2_ref[...],
                 preferred_element_type=jnp.float32)
    h2 = jnp.maximum(h2 + b2_ref[...], 0.0)

    # policy head (output lanes padded to 128; padded lanes have bias -1e30
    # so their softmax weight is exactly 0 and the row max is unaffected)
    logits = jnp.dot(h2.astype(jnp.bfloat16), w3_ref[...],
                     preferred_element_type=jnp.float32) + b3_ref[...]

    # softmax over the action lanes (exact normalization; (bm,1) divide is cheap)
    m = jnp.max(logits, axis=-1, keepdims=True)
    e = jnp.exp(logits - m)
    denom = jnp.sum(e, axis=-1, keepdims=True)
    out_ref[...] = e / denom


# --------------------------------------------------------------------------
# Parameter prep: bf16 weights, f32 biases, lane-pad hiddens + action head
# --------------------------------------------------------------------------
def prepare_params(params):
    """Cast weights to bf16, keep biases f32, zero-pad hidden dims and the
    policy head to 128-lane multiples (padded action lanes get a -1e30 bias)."""
    w1, b1, w2, b2, w3, b3 = params
    in_dim, h1 = w1.shape
    h2 = w2.shape[1]
    n_actions = w3.shape[1]

    h1p = _round_up(max(h1, LANE), LANE)
    h2p = _round_up(max(h2, LANE), LANE)
    n_pad = _round_up(max(n_actions, LANE), LANE)

    w1p = jnp.zeros((in_dim, h1p), jnp.bfloat16)
    w1p = w1p.at[:, :h1].set(w1.astype(jnp.bfloat16))
    b1p = jnp.zeros((1, h1p), jnp.float32)
    b1p = b1p.at[:, :h1].set(b1.astype(jnp.float32).reshape(1, -1))

    w2p = jnp.zeros((h1p, h2p), jnp.bfloat16)
    w2p = w2p.at[:h1, :h2].set(w2.astype(jnp.bfloat16))
    b2p = jnp.zeros((1, h2p), jnp.float32)
    b2p = b2p.at[:, :h2].set(b2.astype(jnp.float32).reshape(1, -1))

    w3p = jnp.zeros((h2p, n_pad), jnp.bfloat16)
    w3p = w3p.at[:h2, :n_actions].set(w3.astype(jnp.bfloat16))
    # Huge negative bias on padded action lanes -> exp underflows to exact 0.
    b3p = jnp.full((1, n_pad), -1e30, jnp.float32)
    b3p = b3p.at[:, :n_actions].set(b3.astype(jnp.float32).reshape(1, -1))

    prepped = (w1p, b1p, w2p, b2p, w3p, b3p)
    return prepped, n_actions


# --------------------------------------------------------------------------
# Wrapper
# --------------------------------------------------------------------------
def _pick_block_rows(b_pad):
    """Batch rows per grid step.

    - capped at 1024 rows (≈10 MiB/step incl. double buffers: fits the default
      scoped-VMEM limit on v5e/v6e/v7x; raise vmem_limit_bytes if pushed ≥2048)
    - for b_pad >= 16, ensure the grid has >= 2 steps so v7x's two TensorCores
      both get work under dimension_semantics=("parallel",).
    """
    if b_pad <= SUBLANE:
        return b_pad
    half = _round_up(pl.cdiv(b_pad, 2), SUBLANE)
    return min(1024, half)


def mlp_policy_forward(x_nchw, prepped, n_actions):
    """x_nchw: (B, C, H, W), any numeric dtype (pass the narrowest upstream
    dtype — uint8/bf16 obs should NOT be pre-cast to f32; the kernel casts
    on-chip). Returns (B, n_actions) f32 probabilities."""
    w1, b1, w2, b2, w3p, b3p = prepped
    B = x_nchw.shape[0]
    in_dim = w1.shape[0]
    h1p = w1.shape[1]
    h2p = w2.shape[1]
    n_pad = w3p.shape[1]

    # PyTorch x.view(B, -1): layout-free reshape; keep the original dtype.
    x = x_nchw.reshape(B, in_dim)

    # Sublane-align the batch, pick the tile, then pad the batch up to a
    # multiple of the tile so the grid covers every row (no dropped remainder).
    B_pad = max(SUBLANE, _round_up(B, SUBLANE))
    bm = _pick_block_rows(B_pad)
    B_pad = _round_up(B_pad, bm)
    if B_pad != B:
        x = jnp.pad(x, ((0, B_pad - B), (0, 0)))
    grid = (B_pad // bm,)

    out = pl.pallas_call(
        mlp_policy_kernel,
        out_shape=jax.ShapeDtypeStruct((B_pad, n_pad), jnp.float32),
        grid_spec=pltpu.PrefetchScalarGridSpec(
            num_scalar_prefetch=0,
            grid=grid,
            in_specs=[
                pl.BlockSpec((bm, in_dim), lambda i: (i, 0)),    # x rows
                pl.BlockSpec((in_dim, h1p), lambda i: (0, 0)),   # w1 (whole)
                pl.BlockSpec((1, h1p), lambda i: (0, 0)),        # b1
                pl.BlockSpec((h1p, h2p), lambda i: (0, 0)),      # w2
                pl.BlockSpec((1, h2p), lambda i: (0, 0)),        # b2
                pl.BlockSpec((h2p, n_pad), lambda i: (0, 0)),    # w3 (padded)
                pl.BlockSpec((1, n_pad), lambda i: (0, 0)),      # b3 (padded)
            ],
            out_specs=pl.BlockSpec((bm, n_pad), lambda i: (i, 0)),
        ),
        compiler_params=pltpu.CompilerParams(
            dimension_semantics=("parallel",)),
    )(x, w1, b1, w2, b2, w3p, b3p)

    return out[:B, :n_actions]


# --------------------------------------------------------------------------
# Deterministic synthetic init + pure-JAX reference
# --------------------------------------------------------------------------
def init_params(key, in_dim, n_actions, hidden=(32, 32)):
    """Synthetic init mirroring nn.Linear (weights stored as (in, out))."""
    h1, h2 = hidden
    k = jax.random.split(key, 6)

    def lin(kw, kb, fan_in, fan_out):
        bound = 1.0 / jnp.sqrt(float(fan_in))
        w = jax.random.uniform(kw, (fan_in, fan_out), jnp.float32, -bound, bound)
        b = jax.random.uniform(kb, (1, fan_out), jnp.float32, -bound, bound)
        return w, b

    w1, b1 = lin(k[0], k[1], in_dim, h1)
    w2, b2 = lin(k[2], k[3], h1, h2)
    w3, b3 = lin(k[4], k[5], h2, n_actions)
    return (w1, b1, w2, b2, w3, b3)


def reference_forward(x_nchw, params):
    """f32 reference matching the PyTorch module's forward."""
    w1, b1, w2, b2, w3, b3 = params
    x = x_nchw.astype(jnp.float32).reshape(x_nchw.shape[0], -1)
    h = jnp.maximum(x @ w1 + b1, 0.0)
    h = jnp.maximum(h @ w2 + b2, 0.0)
    logits = h @ w3 + b3
    return jax.nn.softmax(logits, axis=-1)


if __name__ == "__main__":
    key = jax.random.PRNGKey(0)
    kx, kp = jax.random.split(key)

    # small shapes consistent with the module: grid obs (B, C, H, W)
    B, C, H, W = 2, 4, 16, 16
    in_dim = C * H * W          # 1024
    n_actions = 8
    hidden = (32, 32)

    x = jax.random.normal(kx, (B, C, H, W), dtype=jnp.float32)
    params = init_params(kp, in_dim, n_actions, hidden)
    prepped, n_act = prepare_params(params)

    probs = mlp_policy_forward(x, prepped, n_act)
    probs = jax.block_until_ready(probs)

    # sanity: shape, exact-reciprocal rows sum to 1, and close to f32 reference
    assert probs.shape == (B, n_actions)
    assert jnp.allclose(jnp.sum(probs, axis=-1), 1.0, atol=1e-5)
    ref = reference_forward(x, params)
    assert jnp.allclose(probs, ref, atol=2e-2)   # bf16 weights vs f32 reference

    print("KERNEL_OK")
</pallas_src>

<mosaic_0001>
module attributes {stable_mosaic.version = 11 : i64} {
  func.func @mlp_policy_kernel(%arg0: i32, %arg1: memref<8x1024xf32, #tpu.memory_space<vmem>>, %arg2: memref<1024x128xbf16, #tpu.memory_space<vmem>>, %arg3: memref<1x128xf32, #tpu.memory_space<vmem>>, %arg4: memref<128x128xbf16, #tpu.memory_space<vmem>>, %arg5: memref<1x128xf32, #tpu.memory_space<vmem>>, %arg6: memref<128x128xbf16, #tpu.memory_space<vmem>>, %arg7: memref<1x128xf32, #tpu.memory_space<vmem>>, %arg8: memref<8x128xf32, #tpu.memory_space<vmem>>) attributes {dimension_semantics = [#tpu.dimension_semantics<parallel>], iteration_bounds = array<i64: 1>, scalar_prefetch = 0 : i64, scratch_operands = 0 : i64, tpu.core_type = #tpu.core_type<tc>, window_params = [{transform_indices = @transform_0, window_bounds = array<i64: 8, 1024>}, {pipeline_mode = #tpu.pipeline_mode<synchronous>, transform_indices = @transform_1, window_bounds = array<i64: 1024, 128>}, {pipeline_mode = #tpu.pipeline_mode<synchronous>, transform_indices = @transform_2, window_bounds = array<i64: 1, 128>}, {pipeline_mode = #tpu.pipeline_mode<synchronous>, transform_indices = @transform_3, window_bounds = array<i64: 128, 128>}, {pipeline_mode = #tpu.pipeline_mode<synchronous>, transform_indices = @transform_4, window_bounds = array<i64: 1, 128>}, {pipeline_mode = #tpu.pipeline_mode<synchronous>, transform_indices = @transform_5, window_bounds = array<i64: 128, 128>}, {pipeline_mode = #tpu.pipeline_mode<synchronous>, transform_indices = @transform_6, window_bounds = array<i64: 1, 128>}, {transform_indices = @transform_7, window_bounds = array<i64: 8, 128>}]} {
    %c0 = arith.constant 0 : index
    %c0_0 = arith.constant 0 : index
    %0 = vector.load %arg1[%c0, %c0_0] : memref<8x1024xf32, #tpu.memory_space<vmem>>, vector<8x1024xf32>
    %1 = arith.truncf %0 : vector<8x1024xf32> to vector<8x1024xbf16>
    %c0_1 = arith.constant 0 : index
    %c0_2 = arith.constant 0 : index
    %2 = vector.load %arg2[%c0_1, %c0_2] : memref<1024x128xbf16, #tpu.memory_space<vmem>>, vector<1024x128xbf16>
    %cst = arith.constant dense<0.000000e+00> : vector<8x128xf32>
    %3 = tpu.matmul %1, %2, %cst {dimension_numbers = #tpu.dot_dimension_numbers<[1], [0], [0], [1], [0, 0, 1, 1], [], []>} : vector<8x1024xbf16>, vector<1024x128xbf16>, vector<8x128xf32> -> vector<8x128xf32>
    %c0_3 = arith.constant 0 : index
    %c0_4 = arith.constant 0 : index
    %4 = vector.load %arg3[%c0_3, %c0_4] : memref<1x128xf32, #tpu.memory_space<vmem>>, vector<1x128xf32>
    %5 = vector.broadcast %4 : vector<1x128xf32> to vector<8x128xf32>
    %6 = arith.addf %3, %5 : vector<8x128xf32>
    %cst_5 = arith.constant 0.000000e+00 : f32
    %7 = vector.broadcast %cst_5 : f32 to vector<8x128xf32>
    %8 = arith.maximumf %6, %7 : vector<8x128xf32>
    %9 = arith.truncf %8 : vector<8x128xf32> to vector<8x128xbf16>
    %c0_6 = arith.constant 0 : index
    %c0_7 = arith.constant 0 : index
    %10 = vector.load %arg4[%c0_6, %c0_7] : memref<128x128xbf16, #tpu.memory_space<vmem>>, vector<128x128xbf16>
    %cst_8 = arith.constant dense<0.000000e+00> : vector<8x128xf32>
    %11 = tpu.matmul %9, %10, %cst_8 {dimension_numbers = #tpu.dot_dimension_numbers<[1], [0], [0], [1], [0, 0, 1, 1], [], []>} : vector<8x128xbf16>, vector<128x128xbf16>, vector<8x128xf32> -> vector<8x128xf32>
    %c0_9 = arith.constant 0 : index
    %c0_10 = arith.constant 0 : index
    %12 = vector.load %arg5[%c0_9, %c0_10] : memref<1x128xf32, #tpu.memory_space<vmem>>, vector<1x128xf32>
    %13 = vector.broadcast %12 : vector<1x128xf32> to vector<8x128xf32>
    %14 = arith.addf %11, %13 : vector<8x128xf32>
    %cst_11 = arith.constant 0.000000e+00 : f32
    %15 = vector.broadcast %cst_11 : f32 to vector<8x128xf32>
    %16 = arith.maximumf %14, %15 : vector<8x128xf32>
    %17 = arith.truncf %16 : vector<8x128xf32> to vector<8x128xbf16>
    %c0_12 = arith.constant 0 : index
    %c0_13 = arith.constant 0 : index
    %18 = vector.load %arg6[%c0_12, %c0_13] : memref<128x128xbf16, #tpu.memory_space<vmem>>, vector<128x128xbf16>
    %cst_14 = arith.constant dense<0.000000e+00> : vector<8x128xf32>
    %19 = tpu.matmul %17, %18, %cst_14 {dimension_numbers = #tpu.dot_dimension_numbers<[1], [0], [0], [1], [0, 0, 1, 1], [], []>} : vector<8x128xbf16>, vector<128x128xbf16>, vector<8x128xf32> -> vector<8x128xf32>
    %c0_15 = arith.constant 0 : index
    %c0_16 = arith.constant 0 : index
    %20 = vector.load %arg7[%c0_15, %c0_16] : memref<1x128xf32, #tpu.memory_space<vmem>>, vector<1x128xf32>
    %21 = vector.broadcast %20 : vector<1x128xf32> to vector<8x128xf32>
    %22 = arith.addf %19, %21 : vector<8x128xf32>
    %cst_17 = arith.constant dense<0xFF800000> : vector<8xf32>
    %23 = vector.multi_reduction <maximumf>, %22, %cst_17 [1] : vector<8x128xf32> to vector<8xf32>
    %24 = vector.shape_cast %23 : vector<8xf32> to vector<8x1xf32>
    %25 = vector.broadcast %24 : vector<8x1xf32> to vector<8x128xf32>
    %26 = arith.subf %22, %25 : vector<8x128xf32>
    %27 = math.exp %26 : vector<8x128xf32>
    %cst_18 = arith.constant dense<0.000000e+00> : vector<8xf32>
    %28 = vector.multi_reduction <add>, %27, %cst_18 [1] : vector<8x128xf32> to vector<8xf32>
    %29 = vector.shape_cast %28 : vector<8xf32> to vector<8x1xf32>
    %30 = vector.broadcast %29 : vector<8x1xf32> to vector<8x128xf32>
    %31 = arith.divf %27, %30 : vector<8x128xf32>
    %c0_19 = arith.constant 0 : index
    %c0_20 = arith.constant 0 : index
    %32 = vector.load %arg8[%c0_19, %c0_20] : memref<8x128xf32, #tpu.memory_space<vmem>>, vector<8x128xf32>
    tpu.vector_store %arg8[%c0_19, %c0_20], %31 {strides = array<i32>} : memref<8x128xf32, #tpu.memory_space<vmem>>, vector<8x128xf32>,
    return
  }
  func.func @transform_0(%arg0: i32) -> (i32, i32) {
    %c0_i32 = arith.constant 0 : i32
    %c0_i32_0 = arith.constant 0 : i32
    return %arg0, %c0_i32 : i32, i32
  }
  func.func @transform_1(%arg0: i32) -> (i32, i32) {
    %c0_i32 = arith.constant 0 : i32
    %c0_i32_0 = arith.constant 0 : i32
    %c0_i32_1 = arith.constant 0 : i32
    return %c0_i32, %c0_i32_0 : i32, i32
  }
  func.func @transform_2(%arg0: i32) -> (i32, i32) {
    %c0_i32 = arith.constant 0 : i32
    %c0_i32_0 = arith.constant 0 : i32
    %c0_i32_1 = arith.constant 0 : i32
    return %c0_i32, %c0_i32_0 : i32, i32
  }
  func.func @transform_3(%arg0: i32) -> (i32, i32) {
    %c0_i32 = arith.constant 0 : i32
    %c0_i32_0 = arith.constant 0 : i32
    %c0_i32_1 = arith.constant 0 : i32
    return %c0_i32, %c0_i32_0 : i32, i32
  }
  func.func @transform_4(%arg0: i32) -> (i32, i32) {
    %c0_i32 = arith.constant 0 : i32
    %c0_i32_0 = arith.constant 0 : i32
    %c0_i32_1 = arith.constant 0 : i32
    return %c0_i32, %c0_i32_0 : i32, i32
  }
  func.func @transform_5(%arg0: i32) -> (i32, i32) {
    %c0_i32 = arith.constant 0 : i32
    %c0_i32_0 = arith.constant 0 : i32
    %c0_i32_1 = arith.constant 0 : i32
    return %c0_i32, %c0_i32_0 : i32, i32
  }
  func.func @transform_6(%arg0: i32) -> (i32, i32) {
    %c0_i32 = arith.constant 0 : i32
    %c0_i32_0 = arith.constant 0 : i32
    %c0_i32_1 = arith.constant 0 : i32
    return %c0_i32, %c0_i32_0 : i32, i32
  }
  func.func @transform_7(%arg0: i32) -> (i32, i32) {
    %c0_i32 = arith.constant 0 : i32
    %c0_i32_0 = arith.constant 0 : i32
    return %arg0, %c0_i32 : i32, i32
  }
}

</mosaic_0001>

<bundles_post_ra>
// kernel: tpu_custom_call.1
= control target key start
LH: loop header
LB: loop body
LE: loop exit
PB: predicated region body
PF: predicated region fallthrough
CT: control target
= control target key end

     0   :  { %12 = vsyncpa [#allocation3], 0  ;;  %s1545_s0 = inlined_call_operand.hbm [shape: f32[8,1024], index: 0, kind: input, shape index: {}]   ;;  %s1546_s1 = inlined_call_operand.hbm [shape: bf16[1024,128], index: 1, kind: input, shape index: {}]   ;;  %s1547_s2 = inlined_call_operand.vmem [shape: f32[1,128], index: 2, kind: input, shape index: {}]   ;;  %s1548_s3 = inlined_call_operand.hbm [shape: bf16[128,128], index: 3, kind: input, shape index: {}]   ;;  %s1549_s4 = inlined_call_operand.vmem [shape: f32[1,128], index: 4, kind: input, shape index: {}]   ;;  %s1550_s5 = inlined_call_operand.hbm [shape: bf16[128,128], index: 5, kind: input, shape index: {}]   ;;  %s1551_s6 = inlined_call_operand.vmem [shape: f32[1,128], index: 6, kind: input, shape index: {}]   ;;  %s1552_s7 = inlined_call_operand.hbm [shape: f32[8,128], index: 7, kind: output, shape index: {}]  }
   0x1   :  { %13 = vsyncpa [#allocation6], 0 }
   0x2   :  { %14 = vsyncpa [#allocation9], 0  ;;  %s31_s26 = sshll.u32 %s1546_s1, 4  ;;  %s32_s26 = int_to_ptr.hbm [resolvable:$true] %s31_s26 }
   0x3   :  { %15 = vsyncpa [#allocation4], 0  ;;  %s1474_s27 = smov [#allocation5]   ;;  %s21_s8 = sshll.u32 %s1545_s0, 4  ;;  %s22_s8 = int_to_ptr.hbm [resolvable:$true] %s21_s8 }
   0x4   :  { %s33_s28 = sshll.u32 %s1474_s27, 4  ;;  %s1475_s9 = smov 64   ;;  %s34_s28 = int_to_ptr.vmem [resolvable:$true] %s33_s28 }
   0x5   :  { %s1476_s10 = smov 4   ;;  %s1477_s11 = smov [#allocation2]  }
   0x6   :  { %39 = dma.hbm_to_vmem [thread:$0]  %s32_s26, 8192, %s34_s28, [#allocation6], %s1475_s9, %s1475_s9, %s1476_s10  }
   0x7   :  { %s23_s12 = sshll.u32 %s1477_s11, 4  ;;  %s46_s15 = sshll.u32 %s1548_s3, 4  ;;  %s24_s12 = int_to_ptr.vmem [resolvable:$true] %s23_s12  ;;  %s47_s15 = int_to_ptr.hbm [resolvable:$true] %s46_s15 }
   0x8   :  { %26 = dma.hbm_to_vmem [thread:$0]  %s22_s8, 1024, %s24_s12, [#allocation3]  }
   0x9   :  { %s61_s17 = sshll.u32 %s1550_s5, 4  ;;  %s1478_s18 = smov [#allocation7]   ;;  %s62_s17 = int_to_ptr.hbm [resolvable:$true] %s61_s17 }
   0xa   :  { %s48_s19 = sshll.u32 %s1478_s18, 4  ;;  %s1479_s0 = smov [#allocation8]   ;;  %s49_s19 = int_to_ptr.vmem [resolvable:$true] %s48_s19 }
   0xb   :  { %54 = dma.hbm_to_vmem [thread:$0]  %s47_s15, 1024, %s49_s19, [#allocation6], %s1475_s9, %s1475_s9, %s1476_s10  }
   0xc   :  { %s63_s20 = sshll.u32 %s1479_s0, 4  ;;  %s64_s20 = int_to_ptr.vmem [resolvable:$true] %s63_s20 }
   0xd   :  { %69 = dma.hbm_to_vmem [thread:$0]  %s62_s17, 1024, %s64_s20, [#allocation9], %s1475_s9, %s1475_s9, %s1476_s10  }
   0xe   :  { %1466 = dma.done.wait [#allocation3], 1024  }
   0xf   :  { %1467 = vsyncadd [#allocation3], 4294966272 }
  0x10   :  { %1468 = dma.done.wait [#allocation6], 9216  }
  0x11   :  { %1469 = vsyncadd [#allocation6], 4294958080 }
  0x12   :  { %1470 = dma.done.wait [#allocation9], 1024  }
  0x13   :  { %1471 = vsyncadd [#allocation9], 4294966272  ;;  %v1259_v0 = vld [vmem:[#allocation5 + $0x38] sm:$0xff]  ;;  %v1258_v4 = vld [vmem:[#allocation5 + $0x30] sm:$0xff]  ;;  %s920_s26 = sshll.u32 %s1552_s7, 4  ;;  %s921_s26 = int_to_ptr.hbm [resolvable:$true] %s920_s26 }
  0x14   :  { %v1267_v1 = vld [vmem:[#allocation5 + $0x78] sm:$0xff]  ;;  %620 = vmatpush.bf16.msra.mxu0 %v1259_v0  ;;  %v1266_v5 = vld [vmem:[#allocation5 + $0x70] sm:$0xff]  ;;  %v1257_v8 = vld [vmem:[#allocation5 + $0x28] sm:$0xff] }
  0x15   :  { %v1275_v2 = vld [vmem:[#allocation5 + $0xb8] sm:$0xff]  ;;  %633 = vmatpush.bf16.msra.mxu1 %v1267_v1  ;;  %v1274_v6 = vld [vmem:[#allocation5 + $0xb0] sm:$0xff]  ;;  %v1265_v9 = vld [vmem:[#allocation5 + $0x68] sm:$0xff] }
  0x16   :  { %v1283_v3 = vld [vmem:[#allocation5 + $0xf8] sm:$0xff]  ;;  %646 = vmatpush.bf16.msra.mxu2 %v1275_v2  ;;  %v1282_v7 = vld [vmem:[#allocation5 + $0xf0] sm:$0xff]  ;;  %v1273_v10 = vld [vmem:[#allocation5 + $0xa8] sm:$0xff] }
  0x17   :  { %659 = vmatpush.bf16.msra.mxu3 %v1283_v3  ;;  %v1281_v11 = vld [vmem:[#allocation5 + $0xe8] sm:$0xff]  ;;  %v1256_v12 = vld [vmem:[#allocation5 + $0x20] sm:$0xff]  ;;  %v1255_v16 = vld [vmem:[#allocation5 + $0x18] sm:$0xff] }
  0x18   :  { %621 = vmatpush.bf16.msra.mxu0 %v1258_v4  ;;  %v1264_v13 = vld [vmem:[#allocation5 + $0x60] sm:$0xff]  ;;  %v1263_v17 = vld [vmem:[#allocation5 + $0x58] sm:$0xff]  ;;  %v1254_v20 = vld [vmem:[#allocation5 + $0x10] sm:$0xff] }
  0x19   :  { %634 = vmatpush.bf16.msra.mxu1 %v1266_v5  ;;  %v1272_v14 = vld [vmem:[#allocation5 + $0xa0] sm:$0xff]  ;;  %v1271_v18 = vld [vmem:[#allocation5 + $0x98] sm:$0xff]  ;;  %v1262_v21 = vld [vmem:[#allocation5 + $0x50] sm:$0xff] }
  0x1a   :  { %647 = vmatpush.bf16.msra.mxu2 %v1274_v6  ;;  %v1280_v15 = vld [vmem:[#allocation5 + $0xe0] sm:$0xff]  ;;  %v1279_v19 = vld [vmem:[#allocation5 + $0xd8] sm:$0xff]  ;;  %v1270_v22 = vld [vmem:[#allocation5 + $0x90] sm:$0xff] }
  0x1b   :  { %660 = vmatpush.bf16.msra.mxu3 %v1282_v7  ;;  %v1278_v23 = vld [vmem:[#allocation5 + $0xd0] sm:$0xff]  ;;  %v1253_v24 = vld [vmem:[#allocation5 + $0x8] sm:$0xff]  ;;  %v1252_v28 = vld [vmem:[#allocation5] sm:$0xff] }
  0x1c   :  { %622 = vmatpush.bf16.msra.mxu0 %v1257_v8  ;;  %v1261_v25 = vld [vmem:[#allocation5 + $0x48] sm:$0xff]  ;;  %v1260_v29 = vld [vmem:[#allocation5 + $0x40] sm:$0xff]  ;;  %v1291_v32 = vld [vmem:[#allocation5 + $0x138] sm:$0xff] }
  0x1d   :  { %635 = vmatpush.bf16.msra.mxu1 %v1265_v9  ;;  %v1269_v26 = vld [vmem:[#allocation5 + $0x88] sm:$0xff]  ;;  %v1268_v30 = vld [vmem:[#allocation5 + $0x80] sm:$0xff]  ;;  %v90_v33 = vld [vmem:[#allocation2 + $0x10] sm:$0xff] }
  0x1e   :  { %648 = vmatpush.bf16.msra.mxu2 %v1273_v10  ;;  %v1277_v27 = vld [vmem:[#allocation5 + $0xc8] sm:$0xff]  ;;  %v1276_v31 = vld [vmem:[#allocation5 + $0xc0] sm:$0xff]  ;;  %v1299_v35 = vld [vmem:[#allocation5 + $0x178] sm:$0xff]  ;;  %v98_v40 = vpack.c.bf16 %v90_v33, %v90_v33 }
  0x1f   :  { %661 = vmatpush.bf16.msra.mxu3 %v1281_v11  ;;  %v88_v34 = vld [vmem:[#allocation2] sm:$0xff]  ;;  %v91_v36 = vld [vmem:[#allocation2 + $0x18] sm:$0xff]  ;;  %v89_v37 = vld [vmem:[#allocation2 + $0x8] sm:$0xff] }
  0x20   :  { %623 = vmatpush.bf16.msra.mxu0 %v1256_v12  ;;  %v1307_v38 = vld [vmem:[#allocation5 + $0x1b8] sm:$0xff]  ;;  %v96_v41 = vpack.c.bf16 %v88_v34, %v88_v34  ;;  %v99_v42 = vpack.c.bf16 %v91_v36, %v91_v36  ;;  %v97_v43 = vpack.c.bf16 %v89_v37, %v89_v37  ;;  %v1290_v44 = vld [vmem:[#allocation5 + $0x130] sm:$0xff]  ;;  %v1289_v48 = vld [vmem:[#allocation5 + $0x128] sm:$0xff] }
  0x21   :  { %636 = vmatpush.bf16.msra.mxu1 %v1264_v13  ;;  %v1315_v39 = vld [vmem:[#allocation5 + $0x1f8] sm:$0xff]  ;;  %v1298_v45 = vld [vmem:[#allocation5 + $0x170] sm:$0xff]  ;;  %v1297_v49 = vld [vmem:[#allocation5 + $0x168] sm:$0xff] }
  0x22   :  { %649 = vmatpush.bf16.msra.mxu2 %v1272_v14  ;;  %v1306_v46 = vld [vmem:[#allocation5 + $0x1b0] sm:$0xff]  ;;  %v1305_v50 = vld [vmem:[#allocation5 + $0x1a8] sm:$0xff]  ;;  %v1288_v52 = vld [vmem:[#allocation5 + $0x120] sm:$0xff] }
  0x23   :  { %662 = vmatpush.bf16.msra.mxu3 %v1280_v15  ;;  %v1314_v47 = vld [vmem:[#allocation5 + $0x1f0] sm:$0xff]  ;;  %v1313_v51 = vld [vmem:[#allocation5 + $0x1e8] sm:$0xff]  ;;  %v1296_v53 = vld [vmem:[#allocation5 + $0x160] sm:$0xff] }
  0x24   :  { %624 = vmatpush.bf16.msra.mxu0 %v1255_v16  ;;  %v1304_v54 = vld [vmem:[#allocation5 + $0x1a0] sm:$0xff]  ;;  %v1287_v56 = vld [vmem:[#allocation5 + $0x118] sm:$0xff]  ;;  %v1286_v60 = vld [vmem:[#allocation5 + $0x110] sm:$0xff] }
  0x25   :  { %637 = vmatpush.bf16.msra.mxu1 %v1263_v17  ;;  %v1312_v55 = vld [vmem:[#allocation5 + $0x1e0] sm:$0xff]  ;;  %v1295_v57 = vld [vmem:[#allocation5 + $0x158] sm:$0xff]  ;;  %v1294_v61 = vld [vmem:[#allocation5 + $0x150] sm:$0xff] }
  0x26   :  { %650 = vmatpush.bf16.msra.mxu2 %v1271_v18  ;;  %v1303_v58 = vld [vmem:[#allocation5 + $0x198] sm:$0xff]  ;;  %v1302_v62 = vld [vmem:[#allocation5 + $0x190] sm:$0xff]  ;;  %v1285_v0 = vld [vmem:[#allocation5 + $0x108] sm:$0xff] }
  0x27   :  { %663 = vmatpush.bf16.msra.mxu3 %v1279_v19  ;;  %v1311_v59 = vld [vmem:[#allocation5 + $0x1d8] sm:$0xff]  ;;  %v1310_v63 = vld [vmem:[#allocation5 + $0x1d0] sm:$0xff]  ;;  %v1293_v1 = vld [vmem:[#allocation5 + $0x148] sm:$0xff] }
  0x28   :  { %625 = vmatpush.bf16.msra.mxu0 %v1254_v20  ;;  %v1301_v2 = vld [vmem:[#allocation5 + $0x188] sm:$0xff]  ;;  %v1284_v4 = vld [vmem:[#allocation5 + $0x100] sm:$0xff]  ;;  %v94_v10 = vld [vmem:[#allocation2 + $0x30] sm:$0xff] }
  0x29   :  { %638 = vmatpush.bf16.msra.mxu1 %v1262_v21  ;;  %v1309_v3 = vld [vmem:[#allocation5 + $0x1c8] sm:$0xff]  ;;  %v1292_v5 = vld [vmem:[#allocation5 + $0x140] sm:$0xff]  ;;  %v95_v11 = vld [vmem:[#allocation2 + $0x38] sm:$0xff]  ;;  %v102_v14 = vpack.c.bf16 %v94_v10, %v94_v10 }
  0x2a   :  { %651 = vmatpush.bf16.msra.mxu2 %v1270_v22  ;;  %v1300_v6 = vld [vmem:[#allocation5 + $0x180] sm:$0xff]  ;;  %v93_v8 = vld [vmem:[#allocation2 + $0x28] sm:$0xff]  ;;  %v103_v15 = vpack.c.bf16 %v95_v11, %v95_v11  ;;  %v1323_v16 = vld [vmem:[#allocation7 + $0x38] sm:$0xff] }
  0x2b   :  { %664 = vmatpush.bf16.msra.mxu3 %v1278_v23  ;;  %v92_v7 = vld [vmem:[#allocation2 + $0x20] sm:$0xff]  ;;  %v101_v13 = vpack.c.bf16 %v93_v8, %v93_v8  ;;  %v1322_v17 = vld [vmem:[#allocation7 + $0x30] sm:$0xff]  ;;  %v1321_v18 = vld [vmem:[#allocation7 + $0x28] sm:$0xff] }
  0x2c   :  { %626 = vmatpush.bf16.msra.mxu0 %v1253_v24  ;;  %v1308_v9 = vld [vmem:[#allocation5 + $0x1c0] sm:$0xff]  ;;  %v100_v12 = vpack.c.bf16 %v92_v7, %v92_v7  ;;  %v1319_v20 = vld [vmem:[#allocation7 + $0x18] sm:$0xff]  ;;  %v1318_v22 = vld [vmem:[#allocation7 + $0x10] sm:$0xff] }
  0x2d   :  { %639 = vmatpush.bf16.msra.mxu1 %v1261_v25  ;;  %v1320_v19 = vld [vmem:[#allocation7 + $0x20] sm:$0xff]  ;;  %v1317_v24 = vld [vmem:[#allocation7 + $0x8] sm:$0xff]  ;;  %v1330_v34 = vld [vmem:[#allocation8 + $0x30] sm:$0xff] }
  0x2e   :  { %652 = vmatpush.bf16.msra.mxu2 %v1269_v26  ;;  %v1329_v36 = vld [vmem:[#allocation8 + $0x28] sm:$0xff] }
  0x2f   :  { %665 = vmatpush.bf16.msra.mxu3 %v1277_v27 }
  0x30   :  { %627 = vmatpush.bf16.msra.mxu0 %v1252_v28  ;;  %v1316_v28 = vld [vmem:[#allocation7] sm:$0xff] }
  0x31   :  { %640 = vmatpush.bf16.msra.mxu1 %v1260_v29 }
  0x32   :  { %653 = vmatpush.bf16.msra.mxu2 %v1268_v30  ;;  %v1339_v30 = vld [vmem:[%s1547_s2] ss:$0 sm:$0xff] }
  0x33   :  { %666 = vmatpush.bf16.msra.mxu3 %v1276_v31  ;;  %628 = vmatmul.bf16.vlgmr.msra.gmra.mxu0 %v96_v41  ;;  %v1331_v31 = vld [vmem:[#allocation8 + $0x38] sm:$0xff] }
  0x34   :  { %672 = vmatpush.bf16.msrb.mxu0 %v1291_v32  ;;  %641 = vmatmul.bf16.vlgmr.msra.gmra.mxu1 %v97_v43 }
  0x35   :  { %685 = vmatpush.bf16.msrb.mxu1 %v1299_v35  ;;  %654 = vmatmul.bf16.vlgmr.msra.gmra.mxu2 %v98_v40  ;;  %v1327_v40 = vld [vmem:[#allocation8 + $0x18] sm:$0xff] }
  0x36   :  { %698 = vmatpush.bf16.msrb.mxu2 %v1307_v38  ;;  %667 = vmatmul.bf16.vlgmr.msra.gmra.mxu3 %v99_v42  ;;  %v1328_v38 = vld [vmem:[#allocation8 + $0x20] sm:$0xff] }
  0x37   :  { %711 = vmatpush.bf16.msrb.mxu3 %v1315_v39 }
  0x38   :  { %673 = vmatpush.bf16.msrb.mxu0 %v1290_v44 }
  0x39   :  { %686 = vmatpush.bf16.msrb.mxu1 %v1298_v45  ;;  %v1326_v45 = vld [vmem:[#allocation8 + $0x10] sm:$0xff] }
  0x3a   :  { %699 = vmatpush.bf16.msrb.mxu2 %v1306_v46 }
  0x3b   :  { %712 = vmatpush.bf16.msrb.mxu3 %v1314_v47 }
  0x3c   :  { %674 = vmatpush.bf16.msrb.mxu0 %v1289_v48 }
  0x3d   :  { %687 = vmatpush.bf16.msrb.mxu1 %v1297_v49 }
  0x3e   :  { %700 = vmatpush.bf16.msrb.mxu2 %v1305_v50 }
  0x3f   :  { %713 = vmatpush.bf16.msrb.mxu3 %v1313_v51 }
  0x40   :  { %675 = vmatpush.bf16.msrb.mxu0 %v1288_v52 }
  0x41   :  { %688 = vmatpush.bf16.msrb.mxu1 %v1296_v53 }
  0x42   :  { %701 = vmatpush.bf16.msrb.mxu2 %v1304_v54 }
  0x43   :  { %714 = vmatpush.bf16.msrb.mxu3 %v1312_v55 }
  0x44   :  { %676 = vmatpush.bf16.msrb.mxu0 %v1287_v56 }
  0x45   :  { %689 = vmatpush.bf16.msrb.mxu1 %v1295_v57  ;;  %v1325_v57 = vld [vmem:[#allocation8 + $0x8] sm:$0xff] }
  0x46   :  { %702 = vmatpush.bf16.msrb.mxu2 %v1303_v58  ;;  %v1324_v58 = vld [vmem:[#allocation8] sm:$0xff] }
  0x47   :  { %715 = vmatpush.bf16.msrb.mxu3 %v1311_v59  ;;  %v1340_v59 = vld [vmem:[%s1549_s4] ss:$0 sm:$0xff]  ;;  %s1480_s4 = smov [#allocation10]  }
  0x48   :  { %677 = vmatpush.bf16.msrb.mxu0 %v1286_v60 }
  0x49   :  { %690 = vmatpush.bf16.msrb.mxu1 %v1294_v61 }
  0x4a   :  { %703 = vmatpush.bf16.msrb.mxu2 %v1302_v62 }
  0x4b   :  { %716 = vmatpush.bf16.msrb.mxu3 %v1310_v63 }
  0x4c   :  { %678 = vmatpush.bf16.msrb.mxu0 %v1285_v0 }
  0x4d   :  { %691 = vmatpush.bf16.msrb.mxu1 %v1293_v1  ;;  %v1341_v1 = vld [vmem:[%s1551_s6] ss:$0 sm:$0xff]  ;;  %s918_s6 = sshll.u32 %s1480_s4, 4  ;;  %s919_s6 = int_to_ptr.vmem [resolvable:$true] %s918_s6 }
  0x4e   :  { %704 = vmatpush.bf16.msrb.mxu2 %v1301_v2 }
  0x4f   :  { %717 = vmatpush.bf16.msrb.mxu3 %v1309_v3 }
  0x50   :  { %679 = vmatpush.bf16.msrb.mxu0 %v1284_v4 }
  0x51   :  { %692 = vmatpush.bf16.msrb.mxu1 %v1292_v5 }
  0x52   :  { %705 = vmatpush.bf16.msrb.mxu2 %v1300_v6 }
  0x53   :  { %718 = vmatpush.bf16.msrb.mxu3 %v1308_v9  ;;  %680 = vmatmul.bf16.vlgmr.msrb.gmra.mxu0 %v100_v12 }
  0x54   :  { %693 = vmatmul.bf16.vlgmr.msrb.gmra.mxu1 %v101_v13  ;;  %794 = vmatpush.bf16.msra.mxu0 %v1323_v16 }
  0x55   :  { %706 = vmatmul.bf16.vlgmr.msrb.gmra.mxu2 %v102_v14  ;;  %877 = vmatpush.bf16.msra.mxu1 %v1331_v31 }
  0x56   :  { %719 = vmatmul.bf16.vlgmr.msrb.gmra.mxu3 %v103_v15 }
  0x58   :  { %795 = vmatpush.bf16.msra.mxu0 %v1322_v17 }
  0x59   :  { %878 = vmatpush.bf16.msra.mxu1 %v1330_v34 }
  0x5c   :  { %796 = vmatpush.bf16.msra.mxu0 %v1321_v18 }
  0x5d   :  { %879 = vmatpush.bf16.msra.mxu1 %v1329_v36 }
  0x60   :  { %797 = vmatpush.bf16.msra.mxu0 %v1320_v19 }
  0x61   :  { %880 = vmatpush.bf16.msra.mxu1 %v1328_v38 }
  0x64   :  { %798 = vmatpush.bf16.msra.mxu0 %v1319_v20 }
  0x65   :  { %881 = vmatpush.bf16.msra.mxu1 %v1327_v40 }
  0x68   :  { %799 = vmatpush.bf16.msra.mxu0 %v1318_v22 }
  0x69   :  { %882 = vmatpush.bf16.msra.mxu1 %v1326_v45 }
  0x6c   :  { %800 = vmatpush.bf16.msra.mxu0 %v1317_v24 }
  0x6d   :  { %883 = vmatpush.bf16.msra.mxu1 %v1325_v57 }
  0x70   :  { %801 = vmatpush.bf16.msra.mxu0 %v1316_v28 }
  0x71   :  { %884 = vmatpush.bf16.msra.mxu1 %v1324_v58 }
  0xb0   :  { %v629_v21 = vpop.f32.mrf.mxu0 }
  0xb1   :  { %v642_v23 = vpop.f32.mrf.mxu1  ;;  %v630_v35 = vadd.f32 %v1339_v30, %v629_v21 }
  0xb3   :  { %v643_v37 = vadd.f32 %v642_v23, %v630_v35 }
  0xb8   :  { %v655_v25 = vpop.f32.mrf.mxu2  ;;  %v631_v27 = vpop.f32.mrf.mxu0 }
  0xb9   :  { %v668_v26 = vpop.f32.mrf.mxu3  ;;  %v644_v29 = vpop.f32.mrf.mxu1  ;;  %v656_v39 = vadd.f32 %v655_v25, %v643_v37 }
  0xbb   :  { %v669_v41 = vadd.f32 %v668_v26, %v656_v39 }
  0xc0   :  { %v657_v32 = vpop.f32.mrf.mxu2 }
  0xc1   :  { %v670_v33 = vpop.f32.mrf.mxu3 }
  0xd0   :  { %v681_v42 = vpop.f32.mrf.mxu0 }
  0xd1   :  { %v694_v43 = vpop.f32.mrf.mxu1  ;;  %v682_v44 = vadd.f32 %v681_v42, %v669_v41 }
  0xd3   :  { %v695_v46 = vadd.f32 %v694_v43, %v682_v44 }
  0xd8   :  { %v707_v47 = vpop.f32.mrf.mxu2  ;;  %v683_v50 = vpop.f32.mrf.mxu0 }
  0xd9   :  { %v720_v48 = vpop.f32.mrf.mxu3  ;;  %v708_v49 = vadd.f32 %v707_v47, %v695_v46  ;;  %v696_v51 = vpop.f32.mrf.mxu1 }
  0xdb   :  { %v721_v52 = vadd.f32 %v720_v48, %v708_v49 }
  0xdd   :  { %v724_v53 = vmax.f32 %v721_v52, 0.0 }
  0xdf   :  { %v725_v54 = vpack.c.bf16 %v724_v53, %v724_v53 }
  0xe0   :  { %v709_v55 = vpop.f32.mrf.mxu2 }
  0xe1   :  { %v722_v56 = vpop.f32.mrf.mxu3  ;;  %802 = vmatmul.bf16.vlgmr.msra.gmra.mxu0 %v725_v54 }
 0x15e   :  { %v803_v60 = vpop.f32.mrf.mxu0 }
 0x15f   :  { %v804_v61 = vadd.f32 %v1340_v59, %v803_v60 }
 0x161   :  { %v807_v62 = vmax.f32 %v804_v61, 0.0 }
 0x163   :  { %v808_v63 = vpack.c.bf16 %v807_v62, %v807_v62 }
 0x165   :  { %885 = vmatmul.bf16.vlgmr.msra.gmra.mxu1 %v808_v63 }
 0x166   :  { %v805_v0 = vpop.f32.mrf.mxu0 }
 0x1e2   :  { %v886_v2 = vpop.f32.mrf.mxu1 }
 0x1e3   :  { %v887_v3 = vadd.f32 %v1341_v1, %v886_v2 }
 0x1e5   :  { %890 = vmax.xlane.f32.xlu0 %v887_v3 }
 0x1ea   :  { %v888_v4 = vpop.f32.mrf.mxu1 }
 0x258   :  { %v891_v5 = vpop.xlane.xlu0 %890 }
 0x259   :  { %v892_v6 = vsub.f32 %v887_v3, %v891_v5 }
 0x25b   :  { %v893_v7 = vmul.f32 1.442695, %v892_v6 }
 0x25d   :  { %1342 = vpow2.f32 %v893_v7 }
 0x263   :  { %v1343_v8 = vpop.eup %1342 }
 0x264   :  { %895 = vadd.xlane.f32.xlu0 %v1343_v8 }
 0x2d7   :  { %v896_v9 = vpop.xlane.xlu0 %895 }
 0x2d8   :  { %1344 = vrcp.f32 %v896_v9  ;;  %v908_v13 = vand.u32 2147483648, %v896_v9  ;;  %v906_v15 = vand.u32 2147483647, %v896_v9  ;;  %vm902_vm1 = vweird.f32 %v896_v9 }
 0x2da   :  { %v909_v17 = vor.u32 1.1754944e-38, %v908_v13  ;;  %vm907_vm3 = vcmp.eq.f32.partialorder %v906_v15, 8.507059e+37 }
 0x2de   :  { %v1345_v10 = vpop.eup %1344 }
 0x2df   :  { %v898_v11 = vmul.f32 %v1345_v10, %v896_v9  ;;  %vm903_vm0 = vweird.f32 %v1345_v10 }
 0x2e0   :  { %vm904_vm2 = vmor %vm902_vm1, %vm903_vm0 }
 0x2e1   :  { %v899_v12 = vsub.f32 1.0, %v898_v11 }
 0x2e3   :  { %v900_v14 = vmul.f32 %v1345_v10, %v899_v12 }
 0x2e5   :  { %v901_v16 = vadd.f32 %v1345_v10, %v900_v14 }
 0x2e7   :  { %v905_v18 = vsel %vm904_vm2, %v1345_v10, %v901_v16 }
 0x2e8   :  { %v910_v19 = vsel %vm907_vm3, %v909_v17, %v905_v18 }
 0x2e9   :  { %v911_v20 = vmul.f32 %v1343_v8, %v910_v19 }
 0x2eb   :  { %912 = vst [vmem:[#allocation10] sm:$0xff] %v911_v20 }
 0x2ec   :  { %923 = dma.vmem_to_hbm [thread:$0]  %s919_s6, 128, %s921_s26, [#allocation4]  }
 0x2ed   :  { %1472 = dma.done.wait [#allocation4], 128  }
 0x2ee   :  { %1473 = vsyncadd [#allocation4], 4294967168 }
 0x2ef   :  { %928 = vsyncpa [#allocation3], 1 }
 0x2f0   :  { %929 = vsyncpa [#allocation6], 1 }
 0x2f1   :  { %930 = vsyncpa [#allocation9], 1 }
 0x2f2   :  { %931 = vsyncpa [#allocation4], 1 }

</bundles_post_ra>
